<compile_context>
chip_gen: v6e
topology: v6e:2x2x1
jax: 0.10.0
libtpu: 0.0.40
codegen_flags: <defaults>
</compile_context>

<pallas_src>
import jax
import jax.numpy as jnp
from jax.experimental import pallas as pl
from jax.experimental.pallas import tpu as pltpu


def _round_up(x, m):
    return (x + m - 1) // m * m


# ---------------------------------------------------------------------------
# Kernel bodies
# ---------------------------------------------------------------------------

def _embed_block(x_f32, w1, b1, w2, b2, out_dtype):
    """flatten->Linear->ReLU->Linear on one (tm, D) activation tile.

    bf16 MXU operands, f32 accumulation, f32 bias/ReLU epilogue (v5e has no
    bf16 VPU), bf16 store.
    """
    h = jnp.dot(x_f32.astype(jnp.bfloat16), w1,
                preferred_element_type=jnp.float32)
    h = jnp.maximum(h + b1, 0.0)
    y = jnp.dot(h.astype(jnp.bfloat16), w2,
                preferred_element_type=jnp.float32)
    return (y + b2).astype(out_dtype)


def _siamese_kernel(x1_ref, x2_ref, w1_ref, b1_ref, w2_ref, b2_ref,
                    o1_ref, o2_ref):
    # Shared weights are read once per grid step and feed both branches.
    w1, b1 = w1_ref[...], b1_ref[...]
    w2, b2 = w2_ref[...], b2_ref[...]
    o1_ref[...] = _embed_block(x1_ref[...], w1, b1, w2, b2, o1_ref.dtype)
    o2_ref[...] = _embed_block(x2_ref[...], w1, b1, w2, b2, o2_ref.dtype)


def _single_kernel(x_ref, w1_ref, b1_ref, w2_ref, b2_ref, o_ref):
    o_ref[...] = _embed_block(x_ref[...], w1_ref[...], b1_ref[...],
                              w2_ref[...], b2_ref[...], o_ref.dtype)


# ---------------------------------------------------------------------------
# Tiling / padding helpers
# ---------------------------------------------------------------------------

def _batch_tiling(batch):
    """Return (tm, Mp): batch tile and padded batch size.

    * Mp is the batch rounded up to a multiple of 8 (sublane granularity) and
      then to a multiple of tm, so every block load/store is full & unmasked.
    * tm is capped at 512 rows (near the HBM-roofline knee) and chosen so the
      grid has >= 2 programs whenever the batch allows, letting v7x megacore
      split the "parallel" batch axis across both TensorCores.
    """
    Mp = _round_up(max(batch, 8), 8)
    if Mp <= 8:
        return Mp, Mp
    tm = min(512, _round_up(pl.cdiv(Mp, 2), 8))
    Mp = _round_up(Mp, tm)
    return tm, Mp


def _pad_rows(x, rows):
    if x.shape[0] == rows:
        return x
    return jnp.pad(x, ((0, rows - x.shape[0]), (0, 0)))


# ---------------------------------------------------------------------------
# Parameter prep (one-time, outside the hot path)
# ---------------------------------------------------------------------------

def init_params(key, in_features, hidden, emb_dim):
    k1, k2, k3, k4 = jax.random.split(key, 4)
    w1 = jax.random.normal(k1, (in_features, hidden), jnp.float32) * (2.0 / in_features) ** 0.5
    b1 = jax.random.normal(k2, (1, hidden), jnp.float32) * 0.01
    w2 = jax.random.normal(k3, (hidden, emb_dim), jnp.float32) * (2.0 / hidden) ** 0.5
    b2 = jax.random.normal(k4, (1, emb_dim), jnp.float32) * 0.01
    return w1, b1, w2, b2


def prepare_params(params):
    """One-time prep: bf16 MXU-operand weights, and zero-pad the output layer
    from E to Ep = round_up(E, 128) so all kernel stores are lane-dense."""
    w1, b1, w2, b2 = params
    H, E = w2.shape
    Ep = _round_up(E, 128)
    w2p = jnp.zeros((H, Ep), jnp.float32).at[:, :E].set(w2.astype(jnp.float32))
    b2p = jnp.zeros((1, Ep), jnp.float32).at[:, :E].set(
        b2.reshape(1, -1).astype(jnp.float32))
    return (w1.astype(jnp.bfloat16),
            b1.reshape(1, -1).astype(jnp.float32),
            w2p.astype(jnp.bfloat16),
            b2p,
            E)


# ---------------------------------------------------------------------------
# Forward wrappers
# ---------------------------------------------------------------------------

def _run_embedding(x_slabs, kparams):
    """Run the shared embedding net over one or two (B, D) f32 slabs in a
    single pallas_call (weights DMA'd once, batch axis tiled & parallel)."""
    w1b, b1f, w2b, b2f, E = kparams
    D, H = w1b.shape
    Ep = w2b.shape[1]

    batches = [x.shape[0] for x in x_slabs]
    tm, Mp = _batch_tiling(max(batches))
    xs = [_pad_rows(x, Mp) for x in x_slabs]
    n = len(xs)

    act_spec = pl.BlockSpec((tm, D), lambda i: (i, 0))       # batch-tiled f32 acts
    out_spec = pl.BlockSpec((tm, Ep), lambda i: (i, 0))      # lane-dense bf16 out
    weight_specs = [
        pl.BlockSpec((D, H), lambda i: (0, 0)),              # resident across grid
        pl.BlockSpec((1, H), lambda i: (0, 0)),
        pl.BlockSpec((H, Ep), lambda i: (0, 0)),
        pl.BlockSpec((1, Ep), lambda i: (0, 0)),
    ]

    kernel = _siamese_kernel if n == 2 else _single_kernel
    out_shape = tuple(jax.ShapeDtypeStruct((Mp, Ep), jnp.bfloat16)
                      for _ in range(n))

    outs = pl.pallas_call(
        kernel,
        out_shape=out_shape,
        grid=(Mp // tm,),
        in_specs=[act_spec] * n + weight_specs,
        out_specs=tuple(out_spec for _ in range(n)),
        compiler_params=pltpu.CompilerParams(
            dimension_semantics=("parallel",)),   # batch axis -> both TCs on v7x
    )(*xs, w1b, b1f, w2b, b2f)

    # Drop padded rows / lanes; return f32 like the PyTorch module.
    return tuple(o[:b, :E].astype(jnp.float32) for o, b in zip(outs, batches))


def siamese_net_forward(x1, x2, kparams):
    """SiameseNet.forward: both branches through ONE fused pallas_call."""
    x1f = x1.reshape(x1.shape[0], -1)   # stays f32; bf16 cast happens in-kernel
    x2f = x2.reshape(x2.shape[0], -1)
    o1, o2 = _run_embedding((x1f, x2f), kparams)
    return o1, o2


def siamese_get_embedding(x, kparams):
    """SiameseNet.get_embedding: single branch, same kernel body / weights."""
    (o,) = _run_embedding((x.reshape(x.shape[0], -1),), kparams)
    return o


# ---------------------------------------------------------------------------
# Demo / self-check
# ---------------------------------------------------------------------------

if __name__ == "__main__":
    # Small shapes consistent with the forward: two NCHW image batches.
    B, C, Hs, Ws = 2, 4, 16, 16
    D = C * Hs * Ws          # 1024 flattened features
    HIDDEN = 128
    EMB = 32

    key = jax.random.PRNGKey(0)
    kx1, kx2, kp = jax.random.split(key, 3)
    x1 = jax.random.normal(kx1, (B, C, Hs, Ws), jnp.float32)
    x2 = jax.random.normal(kx2, (B, C, Hs, Ws), jnp.float32)
    params = init_params(kp, D, HIDDEN, EMB)
    kparams = prepare_params(params)          # one-time bf16 cast + lane padding

    fwd = jax.jit(lambda a, b: siamese_net_forward(a, b, kparams))
    out1, out2 = fwd(x1, x2)
    jax.block_until_ready((out1, out2))

    # Reference in plain JAX with the same bf16-operand / f32-accumulate math.
    def ref_embed(x):
        w1, b1, w2, b2 = params
        xb = x.reshape(x.shape[0], -1).astype(jnp.bfloat16)
        h = jnp.maximum(
            jnp.dot(xb, w1.astype(jnp.bfloat16),
                    preferred_element_type=jnp.float32) + b1, 0.0)
        return jnp.dot(h.astype(jnp.bfloat16), w2.astype(jnp.bfloat16),
                       preferred_element_type=jnp.float32) + b2

    r1, r2 = ref_embed(x1), ref_embed(x2)
    assert out1.shape == (B, EMB) and out2.shape == (B, EMB)
    # Kernel stores bf16 -> compare with bf16-level tolerance.
    assert jnp.allclose(out1, r1, atol=2e-2, rtol=2e-2)
    assert jnp.allclose(out2, r2, atol=2e-2, rtol=2e-2)

    # get_embedding path shares the same kernel body / weights.
    emb = jax.jit(lambda a: siamese_get_embedding(a, kparams))
    e1 = emb(x1)
    jax.block_until_ready(e1)
    assert e1.shape == (B, EMB)
    assert jnp.allclose(e1, r1, atol=2e-2, rtol=2e-2)

    print("KERNEL_OK")
</pallas_src>

<mosaic_0001>
module attributes {stable_mosaic.version = 11 : i64} {
  func.func @_siamese_kernel(%arg0: i32, %arg1: memref<8x1024xf32, #tpu.memory_space<vmem>>, %arg2: memref<8x1024xf32, #tpu.memory_space<vmem>>, %arg3: memref<1024x128xbf16, #tpu.memory_space<vmem>>, %arg4: memref<1x128xf32, #tpu.memory_space<vmem>>, %arg5: memref<128x128xbf16, #tpu.memory_space<vmem>>, %arg6: memref<1x128xf32, #tpu.memory_space<vmem>>, %arg7: memref<8x128xbf16, #tpu.memory_space<vmem>>, %arg8: memref<8x128xbf16, #tpu.memory_space<vmem>>) attributes {dimension_semantics = [#tpu.dimension_semantics<parallel>], iteration_bounds = array<i64: 1>, scalar_prefetch = 0 : i64, scratch_operands = 0 : i64, tpu.core_type = #tpu.core_type<tc>, window_params = [{transform_indices = @transform_0, window_bounds = array<i64: 8, 1024>}, {transform_indices = @transform_1, window_bounds = array<i64: 8, 1024>}, {pipeline_mode = #tpu.pipeline_mode<synchronous>, transform_indices = @transform_2, window_bounds = array<i64: 1024, 128>}, {pipeline_mode = #tpu.pipeline_mode<synchronous>, transform_indices = @transform_3, window_bounds = array<i64: 1, 128>}, {pipeline_mode = #tpu.pipeline_mode<synchronous>, transform_indices = @transform_4, window_bounds = array<i64: 128, 128>}, {pipeline_mode = #tpu.pipeline_mode<synchronous>, transform_indices = @transform_5, window_bounds = array<i64: 1, 128>}, {transform_indices = @transform_6, window_bounds = array<i64: 8, 128>}, {transform_indices = @transform_7, window_bounds = array<i64: 8, 128>}]} {
    %c0 = arith.constant 0 : index
    %c0_0 = arith.constant 0 : index
    %0 = vector.load %arg3[%c0, %c0_0] : memref<1024x128xbf16, #tpu.memory_space<vmem>>, vector<1024x128xbf16>
    %c0_1 = arith.constant 0 : index
    %c0_2 = arith.constant 0 : index
    %1 = vector.load %arg4[%c0_1, %c0_2] : memref<1x128xf32, #tpu.memory_space<vmem>>, vector<1x128xf32>
    %c0_3 = arith.constant 0 : index
    %c0_4 = arith.constant 0 : index
    %2 = vector.load %arg5[%c0_3, %c0_4] : memref<128x128xbf16, #tpu.memory_space<vmem>>, vector<128x128xbf16>
    %c0_5 = arith.constant 0 : index
    %c0_6 = arith.constant 0 : index
    %3 = vector.load %arg6[%c0_5, %c0_6] : memref<1x128xf32, #tpu.memory_space<vmem>>, vector<1x128xf32>
    %c0_7 = arith.constant 0 : index
    %c0_8 = arith.constant 0 : index
    %4 = vector.load %arg1[%c0_7, %c0_8] : memref<8x1024xf32, #tpu.memory_space<vmem>>, vector<8x1024xf32>
    %5 = arith.truncf %4 : vector<8x1024xf32> to vector<8x1024xbf16>
    %cst = arith.constant dense<0.000000e+00> : vector<8x128xf32>
    %6 = tpu.matmul %5, %0, %cst {dimension_numbers = #tpu.dot_dimension_numbers<[1], [0], [0], [1], [0, 0, 1, 1], [], []>} : vector<8x1024xbf16>, vector<1024x128xbf16>, vector<8x128xf32> -> vector<8x128xf32>
    %7 = vector.broadcast %1 : vector<1x128xf32> to vector<8x128xf32>
    %8 = arith.addf %6, %7 : vector<8x128xf32>
    %cst_9 = arith.constant 0.000000e+00 : f32
    %9 = vector.broadcast %cst_9 : f32 to vector<8x128xf32>
    %10 = arith.maximumf %8, %9 : vector<8x128xf32>
    %11 = arith.truncf %10 : vector<8x128xf32> to vector<8x128xbf16>
    %cst_10 = arith.constant dense<0.000000e+00> : vector<8x128xf32>
    %12 = tpu.matmul %11, %2, %cst_10 {dimension_numbers = #tpu.dot_dimension_numbers<[1], [0], [0], [1], [0, 0, 1, 1], [], []>} : vector<8x128xbf16>, vector<128x128xbf16>, vector<8x128xf32> -> vector<8x128xf32>
    %13 = vector.broadcast %3 : vector<1x128xf32> to vector<8x128xf32>
    %14 = arith.addf %12, %13 : vector<8x128xf32>
    %15 = arith.truncf %14 : vector<8x128xf32> to vector<8x128xbf16>
    %c0_11 = arith.constant 0 : index
    %c0_12 = arith.constant 0 : index
    %16 = vector.load %arg7[%c0_11, %c0_12] : memref<8x128xbf16, #tpu.memory_space<vmem>>, vector<8x128xbf16>
    tpu.vector_store %arg7[%c0_11, %c0_12], %15 {strides = array<i32>} : memref<8x128xbf16, #tpu.memory_space<vmem>>, vector<8x128xbf16>,
    %c0_13 = arith.constant 0 : index
    %c0_14 = arith.constant 0 : index
    %17 = vector.load %arg2[%c0_13, %c0_14] : memref<8x1024xf32, #tpu.memory_space<vmem>>, vector<8x1024xf32>
    %18 = arith.truncf %17 : vector<8x1024xf32> to vector<8x1024xbf16>
    %cst_15 = arith.constant dense<0.000000e+00> : vector<8x128xf32>
    %19 = tpu.matmul %18, %0, %cst_15 {dimension_numbers = #tpu.dot_dimension_numbers<[1], [0], [0], [1], [0, 0, 1, 1], [], []>} : vector<8x1024xbf16>, vector<1024x128xbf16>, vector<8x128xf32> -> vector<8x128xf32>
    %20 = vector.broadcast %1 : vector<1x128xf32> to vector<8x128xf32>
    %21 = arith.addf %19, %20 : vector<8x128xf32>
    %cst_16 = arith.constant 0.000000e+00 : f32
    %22 = vector.broadcast %cst_16 : f32 to vector<8x128xf32>
    %23 = arith.maximumf %21, %22 : vector<8x128xf32>
    %24 = arith.truncf %23 : vector<8x128xf32> to vector<8x128xbf16>
    %cst_17 = arith.constant dense<0.000000e+00> : vector<8x128xf32>
    %25 = tpu.matmul %24, %2, %cst_17 {dimension_numbers = #tpu.dot_dimension_numbers<[1], [0], [0], [1], [0, 0, 1, 1], [], []>} : vector<8x128xbf16>, vector<128x128xbf16>, vector<8x128xf32> -> vector<8x128xf32>
    %26 = vector.broadcast %3 : vector<1x128xf32> to vector<8x128xf32>
    %27 = arith.addf %25, %26 : vector<8x128xf32>
    %28 = arith.truncf %27 : vector<8x128xf32> to vector<8x128xbf16>
    %c0_18 = arith.constant 0 : index
    %c0_19 = arith.constant 0 : index
    %29 = vector.load %arg8[%c0_18, %c0_19] : memref<8x128xbf16, #tpu.memory_space<vmem>>, vector<8x128xbf16>
    tpu.vector_store %arg8[%c0_18, %c0_19], %28 {strides = array<i32>} : memref<8x128xbf16, #tpu.memory_space<vmem>>, vector<8x128xbf16>,
    return
  }
  func.func @transform_0(%arg0: i32) -> (i32, i32) {
    %c0_i32 = arith.constant 0 : i32
    %c0_i32_0 = arith.constant 0 : i32
    return %arg0, %c0_i32 : i32, i32
  }
  func.func @transform_1(%arg0: i32) -> (i32, i32) {
    %c0_i32 = arith.constant 0 : i32
    %c0_i32_0 = arith.constant 0 : i32
    return %arg0, %c0_i32 : i32, i32
  }
  func.func @transform_2(%arg0: i32) -> (i32, i32) {
    %c0_i32 = arith.constant 0 : i32
    %c0_i32_0 = arith.constant 0 : i32
    %c0_i32_1 = arith.constant 0 : i32
    return %c0_i32, %c0_i32_0 : i32, i32
  }
  func.func @transform_3(%arg0: i32) -> (i32, i32) {
    %c0_i32 = arith.constant 0 : i32
    %c0_i32_0 = arith.constant 0 : i32
    %c0_i32_1 = arith.constant 0 : i32
    return %c0_i32, %c0_i32_0 : i32, i32
  }
  func.func @transform_4(%arg0: i32) -> (i32, i32) {
    %c0_i32 = arith.constant 0 : i32
    %c0_i32_0 = arith.constant 0 : i32
    %c0_i32_1 = arith.constant 0 : i32
    return %c0_i32, %c0_i32_0 : i32, i32
  }
  func.func @transform_5(%arg0: i32) -> (i32, i32) {
    %c0_i32 = arith.constant 0 : i32
    %c0_i32_0 = arith.constant 0 : i32
    %c0_i32_1 = arith.constant 0 : i32
    return %c0_i32, %c0_i32_0 : i32, i32
  }
  func.func @transform_6(%arg0: i32) -> (i32, i32) {
    %c0_i32 = arith.constant 0 : i32
    %c0_i32_0 = arith.constant 0 : i32
    return %arg0, %c0_i32 : i32, i32
  }
  func.func @transform_7(%arg0: i32) -> (i32, i32) {
    %c0_i32 = arith.constant 0 : i32
    %c0_i32_0 = arith.constant 0 : i32
    return %arg0, %c0_i32 : i32, i32
  }
}

</mosaic_0001>

<bundles_post_ra>
// kernel: _lambda_.1
= control target key start
LH: loop header
LB: loop body
LE: loop exit
PB: predicated region body
PF: predicated region fallthrough
CT: control target
= control target key end

     0   :  { %13 = vsyncpa [#allocation3], 0  ;;  %s1486_s24 = smov [#allocation2]   ;;  %s1898_s0 = inlined_call_operand.vmem [shape: f32[8,1024], index: 0, kind: input, shape index: {}]   ;;  %s1899_s1 = inlined_call_operand.vmem [shape: f32[8,1024], index: 1, kind: input, shape index: {}]   ;;  %s1900_s2 = inlined_call_operand.hbm [shape: bf16[1024,128], index: 2, kind: input, shape index: {}]   ;;  %s1901_s3 = inlined_call_operand.vmem [shape: f32[1,128], index: 3, kind: input, shape index: {}]   ;;  %s1902_s4 = inlined_call_operand.vmem [shape: bf16[128,128], index: 4, kind: input, shape index: {}]   ;;  %s1903_s5 = inlined_call_operand.vmem [shape: f32[1,128], index: 5, kind: input, shape index: {}]   ;;  %s1904_s6 = inlined_call_operand.vmem [shape: bf16[8,128], index: 6, kind: output, shape index: {0}]   ;;  %s1905_s7 = inlined_call_operand.vmem [shape: bf16[8,128], index: 7, kind: output, shape index: {1}]  }
   0x1   :  { %s23_s25 = sshll.u32 %s1486_s24, 4  ;;  %s24_s25 = int_to_ptr.vmem [resolvable:$true] %s23_s25 }
   0x2   :  { %s1472_s26 = scalar_lea.vmem %s24_s25, 8192  ;;  %p1477_p1 = scmp.lt.s32.totalorder %s24_s25, %s24_s25 }
   0x3   :  { %p1473_p0 = scmp.ne.s32.totalorder %s24_s25, %s1472_s26  ;;  %p1478_p2 = scmp.lt.s32.totalorder %s1472_s26, %s1472_s26 }
   0x5   :  { %p1479_p3 = por %p1478_p2, %p1477_p1 }
   0x7   :  { %p1480_p4 = pnand %p1479_p3, %p1473_p0 }
   0x9   :  { %1483 = shalt.err (!%p1480_p4)
}
   0xa   :  { %s1487_s27 = smov 64   ;;  %s1488_s28 = smov 4  }
   0xb   :  { %29 = dma.hbm_to_vmem [thread:$0]  %s1900_s2, 8192, %s24_s25, [#allocation3], %s1487_s27, %s1487_s27, %s1488_s28  }
   0xc   :  { %1484 = dma.done.wait [#allocation3], 8192  }
   0xd   :  { %1485 = vsyncadd [#allocation3], 4294959104  ;;  %v1534_v0 = vld [vmem:[#allocation2 + $0x78] sm:$0xff]   ;;  %v1545_v4 = vld [vmem:[#allocation2 + $0x70] sm:$0xff]   ;;  %vm1490_vm0 = vmmov 0  }
   0xe   :  { %v1536_v1 = vld [vmem:[#allocation2 + $0xf8] sm:$0xff]   ;;  %1153 = vmatprep.subr.bf16.mxu0 %v1534_v0  ;;  %v1548_v5 = vld [vmem:[#allocation2 + $0xf0] sm:$0xff]   ;;  %v1557_v8 = vld [vmem:[#allocation2 + $0x68] sm:$0xff]  }
   0xf   :  { %v1539_v2 = vld [vmem:[#allocation2 + $0x38] sm:$0xff]   ;;  %1175 = vmatprep.subr.bf16.mxu1 %v1536_v1  ;;  %v1551_v6 = vld [vmem:[#allocation2 + $0x30] sm:$0xff]   ;;  %v1560_v9 = vld [vmem:[#allocation2 + $0xe8] sm:$0xff]  }
  0x10   :  { %v1542_v3 = vld [vmem:[#allocation2 + $0xb8] sm:$0xff]   ;;  %1154 = vmatpush3.bf16.msra.mxu0 %v1539_v2  ;;  %v1554_v7 = vld [vmem:[#allocation2 + $0xb0] sm:$0xff]   ;;  %v1563_v10 = vld [vmem:[#allocation2 + $0x28] sm:$0xff]  }
  0x11   :  { %1176 = vmatpush3.bf16.msra.mxu1 %v1542_v3  ;;  %1155 = vmatprep.subr.bf16.mxu0 %v1545_v4  ;;  %v1566_v11 = vld [vmem:[#allocation2 + $0xa8] sm:$0xff]   ;;  %v1569_v12 = vld [vmem:[#allocation2 + $0x60] sm:$0xff]   ;;  %v1581_v16 = vld [vmem:[#allocation2 + $0x58] sm:$0xff]  }
  0x12   :  { %1177 = vmatprep.subr.bf16.mxu1 %v1548_v5  ;;  %v1572_v13 = vld [vmem:[#allocation2 + $0xe0] sm:$0xff]   ;;  %v1584_v17 = vld [vmem:[#allocation2 + $0xd8] sm:$0xff]   ;;  %v1593_v20 = vld [vmem:[#allocation2 + $0x50] sm:$0xff]  }
  0x13   :  { %v1575_v14 = vld [vmem:[#allocation2 + $0x20] sm:$0xff]   ;;  %v1587_v18 = vld [vmem:[#allocation2 + $0x18] sm:$0xff]   ;;  %v1596_v21 = vld [vmem:[#allocation2 + $0xd0] sm:$0xff]  }
  0x14   :  { %1156 = vmatpush3.bf16.msra.mxu0 %v1551_v6  ;;  %v1578_v15 = vld [vmem:[#allocation2 + $0xa0] sm:$0xff]   ;;  %v1590_v19 = vld [vmem:[#allocation2 + $0x98] sm:$0xff]   ;;  %v1599_v22 = vld [vmem:[#allocation2 + $0x10] sm:$0xff]  }
  0x15   :  { %1178 = vmatpush3.bf16.msra.mxu1 %v1554_v7  ;;  %1157 = vmatprep.subr.bf16.mxu0 %v1557_v8  ;;  %v1602_v23 = vld [vmem:[#allocation2 + $0x90] sm:$0xff]   ;;  %v1605_v24 = vld [vmem:[#allocation2 + $0x48] sm:$0xff]   ;;  %v1617_v28 = vld [vmem:[#allocation2 + $0x40] sm:$0xff]  }
  0x16   :  { %1179 = vmatprep.subr.bf16.mxu1 %v1560_v9  ;;  %v1608_v25 = vld [vmem:[#allocation2 + $0xc8] sm:$0xff]   ;;  %v1620_v29 = vld [vmem:[#allocation2 + $0xc0] sm:$0xff]   ;;  %v189_v33 = vld [vmem:[%s1898_s0 + $0x18] sm:$0xff] }
  0x17   :  { %v1611_v26 = vld [vmem:[#allocation2 + $0x8] sm:$0xff]   ;;  %v1623_v30 = vld [vmem:[#allocation2] sm:$0xff]   ;;  %v197_v36 = vpack.c.bf16 %v189_v33, %v189_v33  ;;  %v188_v38 = vld [vmem:[%s1898_s0 + $0x10] sm:$0xff] }
  0x18   :  { %1158 = vmatpush3.bf16.msra.mxu0 %v1563_v10  ;;  %v1614_v27 = vld [vmem:[#allocation2 + $0x88] sm:$0xff]   ;;  %v1626_v31 = vld [vmem:[#allocation2 + $0x80] sm:$0xff]   ;;  %v196_v39 = vpack.c.bf16 %v188_v38, %v188_v38  ;;  %v1642_v40 = vld [vmem:[#allocation2 + $0x178] sm:$0xff]  }
  0x19   :  { %1180 = vmatpush3.bf16.msra.mxu1 %v1566_v11  ;;  %1159 = vmatprep.subr.bf16.mxu0 %v1569_v12  ;;  %v187_v32 = vld [vmem:[%s1898_s0 + $0x8] sm:$0xff]  ;;  %v186_v34 = vld [vmem:[%s1898_s0] sm:$0xff]  ;;  %v1644_v41 = vld [vmem:[#allocation2 + $0x1f8] sm:$0xff]  }
  0x1a   :  { %1181 = vmatprep.subr.bf16.mxu1 %v1572_v13  ;;  %v195_v35 = vpack.c.bf16 %v187_v32, %v187_v32  ;;  %v194_v37 = vpack.c.bf16 %v186_v34, %v186_v34  ;;  %664 = vmatprep.mubr.bf16.mxu1 %v197_v36  ;;  %v1646_v42 = vld [vmem:[#allocation2 + $0x138] sm:$0xff]   ;;  %v1653_v44 = vld [vmem:[#allocation2 + $0x170] sm:$0xff]   ;;  %v1665_v48 = vld [vmem:[#allocation2 + $0x168] sm:$0xff]  }
  0x1b   :  { %v1650_v43 = vld [vmem:[#allocation2 + $0x1b8] sm:$0xff]   ;;  %v1656_v45 = vld [vmem:[#allocation2 + $0x1f0] sm:$0xff]   ;;  %v1668_v49 = vld [vmem:[#allocation2 + $0x1e8] sm:$0xff]  }
  0x1c   :  { %1160 = vmatpush3.bf16.msra.mxu0 %v1575_v14  ;;  %624 = vmatprep.mubr.bf16.mxu0 %v195_v35  ;;  %v1659_v46 = vld [vmem:[#allocation2 + $0x130] sm:$0xff]   ;;  %v1671_v50 = vld [vmem:[#allocation2 + $0x128] sm:$0xff]   ;;  %v1677_v52 = vld [vmem:[#allocation2 + $0x160] sm:$0xff]  }
  0x1d   :  { %1182 = vmatpush3.bf16.msra.mxu1 %v1578_v15  ;;  %1161 = vmatprep.subr.bf16.mxu0 %v1581_v16  ;;  %v1662_v47 = vld [vmem:[#allocation2 + $0x1b0] sm:$0xff]   ;;  %v1674_v51 = vld [vmem:[#allocation2 + $0x1a8] sm:$0xff]   ;;  %v1680_v53 = vld [vmem:[#allocation2 + $0x1e0] sm:$0xff]  }
  0x1e   :  { %1183 = vmatprep.subr.bf16.mxu1 %v1584_v17  ;;  %v1683_v54 = vld [vmem:[#allocation2 + $0x120] sm:$0xff]   ;;  %v1689_v56 = vld [vmem:[#allocation2 + $0x158] sm:$0xff]   ;;  %v1701_v60 = vld [vmem:[#allocation2 + $0x150] sm:$0xff]  }
  0x1f   :  { %v1686_v55 = vld [vmem:[#allocation2 + $0x1a0] sm:$0xff]   ;;  %v1692_v57 = vld [vmem:[#allocation2 + $0x1d8] sm:$0xff]   ;;  %v1704_v61 = vld [vmem:[#allocation2 + $0x1d0] sm:$0xff]  }
  0x20   :  { %1162 = vmatpush3.bf16.msra.mxu0 %v1587_v18  ;;  %1914 = vst [vmem:[#allocation5_spill] sm:$0xff] %v1686_v55  ;;  %1915 = vst [vmem:[#allocation6_spill] sm:$0xff] %v1692_v57  ;;  %v1695_v58 = vld [vmem:[#allocation2 + $0x118] sm:$0xff]   ;;  %v1707_v62 = vld [vmem:[#allocation2 + $0x110] sm:$0xff]  }
  0x21   :  { %1184 = vmatpush3.bf16.msra.mxu1 %v1590_v19  ;;  %1163 = vmatprep.subr.bf16.mxu0 %v1593_v20  ;;  %v1698_v59 = vld [vmem:[#allocation2 + $0x198] sm:$0xff]   ;;  %1917 = vst [vmem:[#allocation8_spill] sm:$0xff] %v1704_v61  ;;  %v1710_v63 = vld [vmem:[#allocation2 + $0x190] sm:$0xff]   ;;  %v1713_v32 = vld [vmem:[#allocation2 + $0x148] sm:$0xff]  }
  0x22   :  { %1185 = vmatprep.subr.bf16.mxu1 %v1596_v21  ;;  %1916 = vst [vmem:[#allocation7_spill] sm:$0xff] %v1698_v59  ;;  %1918 = vst [vmem:[#allocation9_spill] sm:$0xff] %v1710_v63  ;;  %v1716_v33 = vld [vmem:[#allocation2 + $0x1c8] sm:$0xff]   ;;  %v1725_v36 = vld [vmem:[#allocation2 + $0x140] sm:$0xff]  }
  0x23   :  { %1919 = vst [vmem:[#allocation10_spill] sm:$0xff] %v1716_v33  ;;  %v1719_v34 = vld [vmem:[#allocation2 + $0x108] sm:$0xff]   ;;  %v1731_v38 = vld [vmem:[#allocation2 + $0x100] sm:$0xff]  }
  0x24   :  { %1164 = vmatpush3.bf16.msra.mxu0 %v1599_v22  ;;  %v1722_v35 = vld [vmem:[#allocation2 + $0x188] sm:$0xff]  }
  0x25   :  { %1186 = vmatpush3.bf16.msra.mxu1 %v1602_v23  ;;  %1165 = vmatprep.subr.bf16.mxu0 %v1605_v24  ;;  %1920 = vst [vmem:[#allocation11_spill] sm:$0xff] %v1722_v35 }
  0x26   :  { %1187 = vmatprep.subr.bf16.mxu1 %v1608_v25 }
  0x28   :  { %1166 = vmatpush3.bf16.msra.mxu0 %v1611_v26 }
  0x29   :  { %1188 = vmatpush3.bf16.msra.mxu1 %v1614_v27  ;;  %1167 = vmatprep.subr.bf16.mxu0 %v1617_v28 }
  0x2a   :  { %1189 = vmatprep.subr.bf16.mxu1 %v1620_v29 }
  0x2c   :  { %1168 = vmatpush3.bf16.msra.mxu0 %v1623_v30 }
  0x2d   :  { %1190 = vmatpush3.bf16.msra.mxu1 %v1626_v31  ;;  %1197 = vmatprep.subr.bf16.mxu0 %v1642_v40 }
  0x2e   :  { %1219 = vmatprep.subr.bf16.mxu1 %v1644_v41 }
  0x2f   :  { %625 = vmatmul.mubr.bf16.vlgmr.msra.gmra.mxu0 %v194_v37  ;;  %v1728_v37 = vld [vmem:[#allocation2 + $0x1c0] sm:$0xff]  }
  0x30   :  { %665 = vmatmul.mubr.bf16.vlgmr.msra.gmra.mxu1 %v196_v39  ;;  %1198 = vmatpush3.bf16.msra.mxu0 %v1646_v42  ;;  %1921 = vst [vmem:[#allocation12_spill] sm:$0xff] %v1728_v37  ;;  %v1734_v39 = vld [vmem:[#allocation2 + $0x180] sm:$0xff]  }
  0x31   :  { %1220 = vmatpush3.bf16.msra.mxu1 %v1650_v43  ;;  %1199 = vmatprep.subr.bf16.mxu0 %v1653_v44 }
  0x32   :  { %1221 = vmatprep.subr.bf16.mxu1 %v1656_v45 }
  0x34   :  { %1200 = vmatpush3.bf16.msra.mxu0 %v1659_v46 }
  0x35   :  { %1222 = vmatpush3.bf16.msra.mxu1 %v1662_v47  ;;  %1201 = vmatprep.subr.bf16.mxu0 %v1665_v48 }
  0x36   :  { %1223 = vmatprep.subr.bf16.mxu1 %v1668_v49 }
  0x38   :  { %1202 = vmatpush3.bf16.msra.mxu0 %v1671_v50 }
  0x39   :  { %1224 = vmatpush3.bf16.msra.mxu1 %v1674_v51  ;;  %1203 = vmatprep.subr.bf16.mxu0 %v1677_v52 }
  0x3a   :  { %1225 = vmatprep.subr.bf16.mxu1 %v1680_v53 }
  0x3c   :  { %1204 = vmatpush3.bf16.msra.mxu0 %v1683_v54 }
  0x3d   :  { %1226 = vmatpush3.bf16.msra.mxu1 %v1686_v55  ;;  %1205 = vmatprep.subr.bf16.mxu0 %v1689_v56 }
  0x3e   :  { %1227 = vmatprep.subr.bf16.mxu1 %v1692_v57 }
  0x40   :  { %1206 = vmatpush3.bf16.msra.mxu0 %v1695_v58 }
  0x41   :  { %1228 = vmatpush3.bf16.msra.mxu1 %v1698_v59  ;;  %1207 = vmatprep.subr.bf16.mxu0 %v1701_v60  ;;  %v190_v59 = vld [vmem:[%s1898_s0 + $0x20] sm:$0xff] }
  0x42   :  { %1229 = vmatprep.subr.bf16.mxu1 %v1704_v61  ;;  %v198_v57 = vpack.c.bf16 %v190_v59, %v190_v59 }
  0x44   :  { %1208 = vmatpush3.bf16.msra.mxu0 %v1707_v62 }
  0x45   :  { %1230 = vmatpush3.bf16.msra.mxu1 %v1710_v63  ;;  %1209 = vmatprep.subr.bf16.mxu0 %v1713_v32  ;;  %v193_v63 = vld [vmem:[%s1898_s0 + $0x38] sm:$0xff] }
  0x46   :  { %1231 = vmatprep.subr.bf16.mxu1 %v1716_v33  ;;  %v191_v33 = vld [vmem:[%s1898_s0 + $0x28] sm:$0xff]  ;;  %v201_v61 = vpack.c.bf16 %v193_v63, %v193_v63 }
  0x48   :  { %1210 = vmatpush3.bf16.msra.mxu0 %v1719_v34  ;;  %744 = vmatprep.mubr.bf16.mxu1 %v201_v61 }
  0x49   :  { %1232 = vmatpush3.bf16.msra.mxu1 %v1722_v35  ;;  %1211 = vmatprep.subr.bf16.mxu0 %v1725_v36  ;;  %v199_v35 = vpack.c.bf16 %v191_v33, %v191_v33 }
  0x4a   :  { %1233 = vmatprep.subr.bf16.mxu1 %v1728_v37  ;;  %v192_v37 = vld [vmem:[%s1898_s0 + $0x30] sm:$0xff] }
  0x4b   :  { %v200_v55 = vpack.c.bf16 %v192_v37, %v192_v37  ;;  %704 = vmatprep.mubr.bf16.mxu0 %v199_v35 }
  0x4c   :  { %1212 = vmatpush3.bf16.msra.mxu0 %v1731_v38 }
  0x4d   :  { %1234 = vmatpush3.bf16.msra.mxu1 %v1734_v39 }
  0x4e   :  { %1250 = vmatprep.subr.bf16.mxu1 %v1534_v0  ;;  %v1456_v0 = vld [vmem:[%s1902_s4 + $0x38] sm:$0xff]  }
  0x4f   :  { %705 = vmatmul.mubr.bf16.vlgmr.msra.gmra.mxu0 %v198_v57 }
  0x50   :  { %745 = vmatmul.mubr.bf16.vlgmr.msra.gmra.mxu1 %v200_v55 }
  0x51   :  { %1251 = vmatpush3.bf16.msra.mxu1 %v1539_v2  ;;  %v1489_v2 = vmov 0.0  }
  0x52   :  { %1252 = vmatprep.subr.bf16.mxu1 %v1545_v4  ;;  %1347 = vmatprep.subr.bf16.mxu0 %v1489_v2  ;;  %v1457_v4 = vld [vmem:[%s1902_s4 + $0x30] sm:$0xff]  }
  0x53   :  { %1348 = vmatpush3.bf16.msra.mxu0 %v1456_v0  ;;  %1363 = vmatprep.mubr.msk.bf16.mxu0 %vm1490_vm0, %v1489_v2 }
  0x54   :  { %1349 = vmatprep.subr.bf16.mxu0 %v1489_v2 }
  0x55   :  { %1253 = vmatpush3.bf16.msra.mxu1 %v1551_v6  ;;  %v1458_v6 = vld [vmem:[%s1902_s4 + $0x28] sm:$0xff]  }
  0x56   :  { %1254 = vmatprep.subr.bf16.mxu1 %v1557_v8  ;;  %v1459_v8 = vld [vmem:[%s1902_s4 + $0x20] sm:$0xff]  }
  0x57   :  { %1350 = vmatpush3.bf16.msra.mxu0 %v1457_v4 }
  0x58   :  { %1351 = vmatprep.subr.bf16.mxu0 %v1489_v2 }
  0x59   :  { %1255 = vmatpush3.bf16.msra.mxu1 %v1563_v10  ;;  %v1460_v10 = vld [vmem:[%s1902_s4 + $0x18] sm:$0xff]  }
  0x5a   :  { %1256 = vmatprep.subr.bf16.mxu1 %v1569_v12  ;;  %v1461_v12 = vld [vmem:[%s1902_s4 + $0x10] sm:$0xff]  }
  0x5b   :  { %1352 = vmatpush3.bf16.msra.mxu0 %v1458_v6 }
  0x5c   :  { %1353 = vmatprep.subr.bf16.mxu0 %v1489_v2 }
  0x5d   :  { %1257 = vmatpush3.bf16.msra.mxu1 %v1575_v14  ;;  %v1462_v14 = vld [vmem:[%s1902_s4 + $0x8] sm:$0xff]  }
  0x5e   :  { %1258 = vmatprep.subr.bf16.mxu1 %v1581_v16  ;;  %v1463_v16 = vld [vmem:[%s1902_s4] sm:$0xff]  }
  0x5f   :  { %1354 = vmatpush3.bf16.msra.mxu0 %v1459_v8 }
  0x60   :  { %1355 = vmatprep.subr.bf16.mxu0 %v1489_v2 }
  0x61   :  { %1259 = vmatpush3.bf16.msra.mxu1 %v1587_v18  ;;  %v851_v18 = vld [vmem:[%s1899_s1 + $0x8] sm:$0xff] }
  0x62   :  { %1260 = vmatprep.subr.bf16.mxu1 %v1593_v20  ;;  %v859_v20 = vpack.c.bf16 %v851_v18, %v851_v18 }
  0x63   :  { %1356 = vmatpush3.bf16.msra.mxu0 %v1460_v10 }
  0x64   :  { %1357 = vmatprep.subr.bf16.mxu0 %v1489_v2  ;;  %898 = vmatprep.mubr.bf16.mxu1 %v859_v20 }
  0x65   :  { %1261 = vmatpush3.bf16.msra.mxu1 %v1599_v22  ;;  %v850_v22 = vld [vmem:[%s1899_s1] sm:$0xff] }
  0x66   :  { %1262 = vmatprep.subr.bf16.mxu1 %v1605_v24  ;;  %v858_v24 = vpack.c.bf16 %v850_v22, %v850_v22 }
  0x67   :  { %1358 = vmatpush3.bf16.msra.mxu0 %v1461_v12 }
  0x68   :  { %1359 = vmatprep.subr.bf16.mxu0 %v1489_v2 }
  0x69   :  { %1263 = vmatpush3.bf16.msra.mxu1 %v1611_v26 }
  0x6a   :  { %1264 = vmatprep.subr.bf16.mxu1 %v1617_v28  ;;  %v854_v28 = vld [vmem:[%s1899_s1 + $0x20] sm:$0xff] }
  0x6b   :  { %1360 = vmatpush3.bf16.msra.mxu0 %v1462_v14 }
  0x6c   :  { %1361 = vmatprep.subr.bf16.mxu0 %v1489_v2 }
  0x6d   :  { %1265 = vmatpush3.bf16.msra.mxu1 %v1623_v30  ;;  %v862_v30 = vpack.c.bf16 %v854_v28, %v854_v28 }
  0x6e   :  { %1294 = vmatprep.subr.bf16.mxu1 %v1642_v40 }
  0x6f   :  { %1362 = vmatpush3.bf16.msra.mxu0 %v1463_v16 }
  0x70   :  { %1272 = vmatprep.subr.bf16.mxu0 %v1536_v1  ;;  %899 = vmatmul.mubr.bf16.vlgmr.msra.gmra.mxu1 %v858_v24  ;;  %v855_v1 = vld [vmem:[%s1899_s1 + $0x28] sm:$0xff] }
  0x71   :  { %1295 = vmatpush3.bf16.msra.mxu1 %v1646_v42  ;;  %v863_v26 = vpack.c.bf16 %v855_v1, %v855_v1 }
  0x72   :  { %1296 = vmatprep.subr.bf16.mxu1 %v1653_v44 }
  0x73   :  { %978 = vmatprep.mubr.bf16.mxu1 %v863_v26 }
  0x75   :  { %1297 = vmatpush3.bf16.msra.mxu1 %v1659_v46 }
  0x76   :  { %1298 = vmatprep.subr.bf16.mxu1 %v1665_v48 }
  0x79   :  { %1299 = vmatpush3.bf16.msra.mxu1 %v1671_v50 }
  0x7a   :  { %1300 = vmatprep.subr.bf16.mxu1 %v1677_v52 }
  0x7d   :  { %1301 = vmatpush3.bf16.msra.mxu1 %v1683_v54 }
  0x7e   :  { %1302 = vmatprep.subr.bf16.mxu1 %v1689_v56  ;;  %v1842_v56 = vld [vmem:[%s1901_s3] ss:$0 sm:$0xff] }
  0x81   :  { %1303 = vmatpush3.bf16.msra.mxu1 %v1695_v58 }
  0x82   :  { %1304 = vmatprep.subr.bf16.mxu1 %v1701_v60 }
  0x85   :  { %1305 = vmatpush3.bf16.msra.mxu1 %v1707_v62 }
  0x86   :  { %1306 = vmatprep.subr.bf16.mxu1 %v1713_v32 }
  0x89   :  { %1307 = vmatpush3.bf16.msra.mxu1 %v1719_v34 }
  0x8a   :  { %1308 = vmatprep.subr.bf16.mxu1 %v1725_v36 }
  0x8d   :  { %1309 = vmatpush3.bf16.msra.mxu1 %v1731_v38 }
  0x8e   :  { %1367 = vmatprep.subr.bf16.mxu1 %v1489_v2 }
  0x90   :  { %979 = vmatmul.mubr.bf16.vlgmr.msra.gmra.mxu1 %v862_v30 }
  0x91   :  { %1368 = vmatpush3.bf16.msra.mxu1 %v1456_v0  ;;  %1383 = vmatprep.mubr.msk.bf16.mxu1 %vm1490_vm0, %v1489_v2 }
  0x92   :  { %1369 = vmatprep.subr.bf16.mxu1 %v1489_v2 }
  0x95   :  { %1370 = vmatpush3.bf16.msra.mxu1 %v1457_v4 }
  0x96   :  { %1371 = vmatprep.subr.bf16.mxu1 %v1489_v2 }
  0x99   :  { %1372 = vmatpush3.bf16.msra.mxu1 %v1458_v6 }
  0x9a   :  { %1373 = vmatprep.subr.bf16.mxu1 %v1489_v2 }
  0x9d   :  { %1374 = vmatpush3.bf16.msra.mxu1 %v1459_v8 }
  0x9e   :  { %1375 = vmatprep.subr.bf16.mxu1 %v1489_v2 }
  0xa1   :  { %1376 = vmatpush3.bf16.msra.mxu1 %v1460_v10 }
  0xa2   :  { %1377 = vmatprep.subr.bf16.mxu1 %v1489_v2 }
  0xa5   :  { %1378 = vmatpush3.bf16.msra.mxu1 %v1461_v12 }
  0xa6   :  { %1379 = vmatprep.subr.bf16.mxu1 %v1489_v2 }
  0xa9   :  { %1380 = vmatpush3.bf16.msra.mxu1 %v1462_v14  ;;  %v1144_v14 = vld [vmem:[%s1903_s5] ss:$0 sm:$0xff] }
  0xaa   :  { %1381 = vmatprep.subr.bf16.mxu1 %v1489_v2  ;;  %v853_v2 = vld [vmem:[%s1899_s1 + $0x18] sm:$0xff] }
  0xab   :  { %v861_v6 = vpack.c.bf16 %v853_v2, %v853_v2 }
  0xad   :  { %1382 = vmatpush3.bf16.msra.mxu1 %v1463_v16 }
  0xef   :  { %v1169_v40 = vpop.f32.mrf.mxu0 }
  0xf0   :  { %v1191_v42 = vpop.f32.mrf.mxu1 }
  0xf1   :  { %v1170_v44 = vpop.f32.mrf.mxu0 }
  0xf2   :  { %v1192_v46 = vpop.f32.mrf.mxu1  ;;  %v1171_v55 = vadd.f32 %v1170_v44, %v1169_v40 }
  0xf3   :  { %v1172_v48 = vpop.f32.mrf.mxu0  ;;  %v1193_v58 = vadd.f32 %v1192_v46, %v1191_v42 }
  0xf4   :  { %v1194_v50 = vpop.f32.mrf.mxu1  ;;  %v627_v57 = vadd.f32 %v1171_v55, %v1842_v56 }
  0xf5   :  { %v1173_v52 = vpop.f32.mrf.mxu0 }
  0xf6   :  { %v1195_v54 = vpop.f32.mrf.mxu1  ;;  %v667_v62 = vadd.f32 %v1193_v58, %v627_v57 }
 0x10f   :  { %v1213_v59 = vpop.f32.mrf.mxu0 }
 0x110   :  { %v1235_v60 = vpop.f32.mrf.mxu1 }
 0x111   :  { %v1214_v61 = vpop.f32.mrf.mxu0 }
 0x112   :  { %v1215_v63 = vadd.f32 %v1214_v61, %v1213_v59  ;;  %v1236_v32 = vpop.f32.mrf.mxu1 }
 0x113   :  { %v1216_v33 = vpop.f32.mrf.mxu0  ;;  %v1237_v35 = vadd.f32 %v1236_v32, %v1235_v60 }
 0x114   :  { %v707_v34 = vadd.f32 %v1215_v63, %v667_v62  ;;  %v1238_v36 = vpop.f32.mrf.mxu1 }
 0x115   :  { %v1217_v37 = vpop.f32.mrf.mxu0 }
 0x116   :  { %v747_v38 = vadd.f32 %v1237_v35, %v707_v34  ;;  %v1239_v0 = vpop.f32.mrf.mxu1 }
 0x118   :  { %v752_v4 = vmax.f32 %v747_v38, 0.0 }
 0x11a   :  { %v753_v8 = vpack.c.bf16 %v752_v4, %v752_v4 }
 0x11c   :  { %1364 = vmatmul.mubr.bf16.vlgmr.msra.gmra.mxu0 %v753_v8 }
 0x11d   :  { %1273 = vmatpush3.bf16.msra.mxu0 %v1542_v3  ;;  %938 = vmatprep.mubr.bf16.mxu0 %v861_v6  ;;  %v852_v3 = vld [vmem:[%s1899_s1 + $0x10] sm:$0xff] }
 0x11e   :  { %1274 = vmatprep.subr.bf16.mxu0 %v1548_v5  ;;  %v857_v5 = vld [vmem:[%s1899_s1 + $0x38] sm:$0xff] }
 0x121   :  { %1275 = vmatpush3.bf16.msra.mxu0 %v1554_v7  ;;  %v860_v7 = vpack.c.bf16 %v852_v3, %v852_v3 }
 0x122   :  { %1276 = vmatprep.subr.bf16.mxu0 %v1560_v9  ;;  %v865_v9 = vpack.c.bf16 %v857_v5, %v857_v5 }
 0x125   :  { %1277 = vmatpush3.bf16.msra.mxu0 %v1566_v11  ;;  %v1922_v11 = vld [vmem:[#allocation5_spill] sm:$0xff] }
 0x126   :  { %1278 = vmatprep.subr.bf16.mxu0 %v1572_v13  ;;  %v1923_v13 = vld [vmem:[#allocation6_spill] sm:$0xff] }
 0x129   :  { %1279 = vmatpush3.bf16.msra.mxu0 %v1578_v15  ;;  %v1924_v15 = vld [vmem:[#allocation7_spill] sm:$0xff] }
 0x12a   :  { %1280 = vmatprep.subr.bf16.mxu0 %v1584_v17  ;;  %v1925_v17 = vld [vmem:[#allocation8_spill] sm:$0xff] }
 0x12d   :  { %1281 = vmatpush3.bf16.msra.mxu0 %v1590_v19  ;;  %v1926_v19 = vld [vmem:[#allocation9_spill] sm:$0xff] }
 0x12e   :  { %1282 = vmatprep.subr.bf16.mxu0 %v1596_v21  ;;  %v1927_v21 = vld [vmem:[#allocation10_spill] sm:$0xff] }
 0x131   :  { %1283 = vmatpush3.bf16.msra.mxu0 %v1602_v23  ;;  %v1928_v23 = vld [vmem:[#allocation11_spill] sm:$0xff] }
 0x132   :  { %1284 = vmatprep.subr.bf16.mxu0 %v1608_v25  ;;  %v856_v25 = vld [vmem:[%s1899_s1 + $0x30] sm:$0xff] }
 0x135   :  { %1285 = vmatpush3.bf16.msra.mxu0 %v1614_v27  ;;  %v1929_v27 = vld [vmem:[#allocation12_spill] sm:$0xff] }
 0x136   :  { %1286 = vmatprep.subr.bf16.mxu0 %v1620_v29  ;;  %v864_v29 = vpack.c.bf16 %v856_v25, %v856_v25 }
 0x139   :  { %1287 = vmatpush3.bf16.msra.mxu0 %v1626_v31  ;;  %v1266_v31 = vpop.f32.mrf.mxu1 }
 0x13a   :  { %1316 = vmatprep.subr.bf16.mxu0 %v1644_v41 }
 0x13b   :  { %v1267_v41 = vpop.f32.mrf.mxu1 }
 0x13c   :  { %939 = vmatmul.mubr.bf16.vlgmr.msra.gmra.mxu0 %v860_v7 }
 0x13d   :  { %1317 = vmatpush3.bf16.msra.mxu0 %v1650_v43  ;;  %1018 = vmatprep.mubr.bf16.mxu0 %v865_v9  ;;  %v1268_v43 = vadd.f32 %v1267_v41, %v1266_v31 }
 0x13e   :  { %1318 = vmatprep.subr.bf16.mxu0 %v1656_v45  ;;  %v1269_v45 = vpop.f32.mrf.mxu1 }
 0x13f   :  { %v901_v26 = vadd.f32 %v1268_v43, %v1842_v56 }
 0x141   :  { %1319 = vmatpush3.bf16.msra.mxu0 %v1662_v47  ;;  %v1270_v47 = vpop.f32.mrf.mxu1 }
 0x142   :  { %1320 = vmatprep.subr.bf16.mxu0 %v1668_v49 }
 0x145   :  { %1321 = vmatpush3.bf16.msra.mxu0 %v1674_v51 }
 0x146   :  { %1322 = vmatprep.subr.bf16.mxu0 %v1680_v53 }
 0x149   :  { %1323 = vmatpush3.bf16.msra.mxu0 %v1922_v11 }
 0x14a   :  { %1324 = vmatprep.subr.bf16.mxu0 %v1923_v13 }
 0x14d   :  { %1325 = vmatpush3.bf16.msra.mxu0 %v1924_v15 }
 0x14e   :  { %1326 = vmatprep.subr.bf16.mxu0 %v1925_v17 }
 0x150   :  { %v1310_v49 = vpop.f32.mrf.mxu1 }
 0x151   :  { %1327 = vmatpush3.bf16.msra.mxu0 %v1926_v19 }
 0x152   :  { %1328 = vmatprep.subr.bf16.mxu0 %v1927_v21  ;;  %v1311_v51 = vpop.f32.mrf.mxu1 }
 0x153   :  { %v1312_v53 = vadd.f32 %v1311_v51, %v1310_v49 }
 0x154   :  { %v1313_v10 = vpop.f32.mrf.mxu1 }
 0x155   :  { %1329 = vmatpush3.bf16.msra.mxu0 %v1928_v23 }
 0x156   :  { %1330 = vmatprep.subr.bf16.mxu0 %v1929_v27  ;;  %v1314_v12 = vpop.f32.mrf.mxu1 }
 0x159   :  { %1331 = vmatpush3.bf16.msra.mxu0 %v1734_v39 }
 0x15c   :  { %1019 = vmatmul.mubr.bf16.vlgmr.msra.gmra.mxu0 %v864_v29 }
 0x1dc   :  { %v842_v16 = vpop.f32.mrf.mxu0 }
 0x1dd   :  { %v843_v18 = vadd.f32 %v1144_v14, %v842_v16 }
 0x1de   :  { %v1365_v20 = vpop.f32.mrf.mxu0 }
 0x1df   :  { %v848_v22 = vpack.c.bf16 %v843_v18, %v843_v18 }
 0x1e0   :  { %v845_v39 = vpop.f32.mrf.mxu0 }
 0x1e1   :  { %849 = vst [vmem:[%s1904_s6] sm:$0xf] %v848_v22 }
 0x1e2   :  { %v1366_v24 = vpop.f32.mrf.mxu0 }
 0x1fc   :  { %v1288_v1 = vpop.f32.mrf.mxu0 }
 0x1fe   :  { %v1289_v28 = vpop.f32.mrf.mxu0 }
 0x1ff   :  { %v1290_v30 = vadd.f32 %v1289_v28, %v1288_v1 }
 0x200   :  { %v1291_v40 = vpop.f32.mrf.mxu0 }
 0x201   :  { %v941_v42 = vadd.f32 %v1290_v30, %v901_v26 }
 0x202   :  { %v1292_v44 = vpop.f32.mrf.mxu0 }
 0x203   :  { %v981_v46 = vadd.f32 %v1312_v53, %v941_v42 }
 0x21c   :  { %v1332_v48 = vpop.f32.mrf.mxu0 }
 0x21e   :  { %v1333_v50 = vpop.f32.mrf.mxu0 }
 0x21f   :  { %v1334_v52 = vadd.f32 %v1333_v50, %v1332_v48 }
 0x220   :  { %v1335_v54 = vpop.f32.mrf.mxu0 }
 0x221   :  { %v1021_v55 = vadd.f32 %v1334_v52, %v981_v46 }
 0x222   :  { %v1336_v57 = vpop.f32.mrf.mxu0 }
 0x223   :  { %v1026_v58 = vmax.f32 %v1021_v55, 0.0 }
 0x225   :  { %v1027_v59 = vpack.c.bf16 %v1026_v58, %v1026_v58 }
 0x227   :  { %1384 = vmatmul.mubr.bf16.vlgmr.msra.gmra.mxu1 %v1027_v59 }
 0x2e7   :  { %v1062_v60 = vpop.f32.mrf.mxu1 }
 0x2e8   :  { %v1063_v61 = vadd.f32 %v1144_v14, %v1062_v60 }
 0x2e9   :  { %v1385_v62 = vpop.f32.mrf.mxu1 }
 0x2ea   :  { %v1068_v63 = vpack.c.bf16 %v1063_v61, %v1063_v61 }
 0x2eb   :  { %v1065_v56 = vpop.f32.mrf.mxu1 }
 0x2ec   :  { %1069 = vst [vmem:[%s1905_s7] sm:$0xf] %v1068_v63 }
 0x2ed   :  { %v1386_v32 = vpop.f32.mrf.mxu1 }
 0x2ee   :  { %1078 = vsyncpa [#allocation3], 1 }

</bundles_post_ra>
